<compile_context>
chip_gen: v5e
topology: v5e:2x2
jax: 0.10.0
libtpu: 0.0.40
codegen_flags: <defaults>
</compile_context>

<pallas_src>
import functools

import jax
import jax.numpy as jnp
from jax.experimental import pallas as pl
from jax.experimental.pallas import tpu as pltpu

LANE = 128
SUBLANE = 8
# Per-pallas_call resident-parameter budget (bf16 weights + f32 biases).  Chosen so
# params + I/O double buffers + activation temporaries fit v7x's 64 MiB VMEM.
_GROUP_PARAM_BUDGET = 40 << 20


def _round_up(n, m):
    return ((n + m - 1) // m) * m


# --------------------------------------------------------------------------- #
# Kernel
# --------------------------------------------------------------------------- #
def _mlp_group_kernel(x_ref, *refs, relu_last):
    """Fused (Linear [+ ReLU]) stack over one batch tile.

    refs = (w1, b1, ..., wN, bN, o_ref).  All weights/biases are VMEM-resident
    (constant index maps).  Matmuls: bf16 operands, f32 accumulation (MXU);
    bias-add / ReLU in f32 (VPU, v5e-safe).
    """
    o_ref = refs[-1]
    wb = refs[:-1]
    n_layers = len(wb) // 2

    h = x_ref[...].astype(jnp.float32)
    for i in range(n_layers):
        w_ref = wb[2 * i]
        b_ref = wb[2 * i + 1]
        y = jnp.dot(h.astype(jnp.bfloat16), w_ref[...],
                    preferred_element_type=jnp.float32)
        y = y + b_ref[...]                       # (1, D) bias broadcasts over rows
        if i < n_layers - 1 or relu_last:
            y = jnp.maximum(y, 0.0)
        h = y
    o_ref[...] = h.astype(o_ref.dtype)


# --------------------------------------------------------------------------- #
# Parameter construction / preparation
# --------------------------------------------------------------------------- #
def init_params(key, input_dim, hidden_dim, output_dim):
    """f32 params mirroring torch.nn.Linear default init:
    U(-1/sqrt(fan_in), 1/sqrt(fan_in)) for weight and bias.
    Weights stored pre-transposed as [in, out] so forward is x @ W + b."""
    dims = ([(input_dim, hidden_dim)]
            + [(hidden_dim, hidden_dim)] * 6
            + [(hidden_dim, output_dim)])
    params = []
    for fan_in, fan_out in dims:
        key, kw, kb = jax.random.split(key, 3)
        bound = 1.0 / (fan_in ** 0.5)
        w = jax.random.uniform(kw, (fan_in, fan_out), jnp.float32, -bound, bound)
        b = jax.random.uniform(kb, (fan_out,), jnp.float32, -bound, bound)
        params.append((w, b))
    return params


def prepare_params(params):
    """Zero-pad only the *internal* (inter-layer) feature dims to multiples of 128
    so every hidden matmul is lane-dense; the network's external input/output dims
    stay logical, so the wrapper never pads x or slices the result.  Padding is
    zero, hence mathematically inert (ReLU(0) = 0).  Weights are cast to bf16 once
    (MXU operand dtype); biases stay f32 with shape (1, D)."""
    n = len(params)
    kparams = []
    for i, (w, b) in enumerate(params):
        fi, fo = w.shape
        fi_p = fi if i == 0 else _round_up(fi, LANE)
        fo_p = fo if i == n - 1 else _round_up(fo, LANE)
        w_p = jnp.zeros((fi_p, fo_p), jnp.bfloat16).at[:fi, :fo].set(
            w.astype(jnp.bfloat16))
        b_p = jnp.zeros((1, fo_p), jnp.float32).at[0, :fo].set(b)
        kparams.append((w_p, b_p))
    return kparams


# --------------------------------------------------------------------------- #
# Forward pass
# --------------------------------------------------------------------------- #
def _pick_tb(batch):
    """Batch-tile rows: big (up to 1024) to amortize per-step overhead and fill
    the MXU, but >= 2 grid steps when the batch allows it so both v7x
    TensorCores get work."""
    if batch <= SUBLANE:
        return batch                      # single full block (block == array dim)
    return min(1024, _round_up(pl.cdiv(batch, 2), SUBLANE))


def _split_groups(kparams):
    """Greedily pack consecutive layers into groups under the VMEM param budget."""
    groups, cur, cur_bytes = [], [], 0
    for (w, b) in kparams:
        nbytes = w.size * w.dtype.itemsize + b.size * b.dtype.itemsize
        if cur and cur_bytes + nbytes > _GROUP_PARAM_BUDGET:
            groups.append(cur)
            cur, cur_bytes = [], 0
        cur.append((w, b))
        cur_bytes += nbytes
    if cur:
        groups.append(cur)
    return groups


def _group_forward(x, group, tb, relu_last, single_buffer):
    batch, in_dim = x.shape
    out_dim = group[-1][0].shape[1]
    grid = (pl.cdiv(batch, tb),)

    weight_kwargs = {"pipeline_mode": pl.Buffered(1)} if single_buffer else {}

    in_specs = [pl.BlockSpec((tb, in_dim), lambda i: (i, 0))]
    flat_args = [x]
    for (w, b) in group:
        flat_args += [w, b]
        # Full-array blocks, constant index maps -> params stay VMEM-resident
        # across all batch tiles; single-buffered when supported (block never
        # changes, so double buffering only wastes VMEM).
        in_specs.append(pl.BlockSpec(w.shape, lambda i: (0, 0), **weight_kwargs))
        in_specs.append(pl.BlockSpec(b.shape, lambda i: (0, 0), **weight_kwargs))
    out_spec = pl.BlockSpec((tb, out_dim), lambda i: (i, 0))

    # Explicit scoped-VMEM budget: resident params (+x2 if double-buffered),
    # double-buffered x/out tiles, generous activation-temporary headroom.
    param_bytes = sum(w.size * w.dtype.itemsize + b.size * b.dtype.itemsize
                      for (w, b) in group)
    if not single_buffer:
        param_bytes *= 2
    widest = max(max(w.shape) for (w, _) in group)
    io_bytes = 2 * tb * (in_dim + out_dim) * 4
    act_bytes = 4 * tb * widest * 4
    vmem_limit = int(min(max(2 * (param_bytes + io_bytes + act_bytes), 32 << 20),
                         64 << 20))

    return pl.pallas_call(
        functools.partial(_mlp_group_kernel, relu_last=relu_last),
        out_shape=jax.ShapeDtypeStruct((batch, out_dim), jnp.float32),
        grid=grid,
        in_specs=in_specs,
        out_specs=out_spec,
        compiler_params=pltpu.CompilerParams(
            dimension_semantics=("parallel",),
            vmem_limit_bytes=vmem_limit),
    )(*flat_args)


@functools.partial(jax.jit, static_argnames=("single_buffer",))
def _nn_forward_impl(x, kparams, single_buffer):
    batch = x.shape[0]
    tb = _pick_tb(batch)
    groups = _split_groups(list(kparams))
    h = x
    for gi, group in enumerate(groups):
        relu_last = gi < len(groups) - 1      # final layer of the net has no ReLU
        h = _group_forward(h, group, tb, relu_last, single_buffer)
    return h


_single_buffer_ok = True


def nn_forward(x, kparams):
    """Forward pass of NN.  x: [B, input_dim] f32, kparams from prepare_params."""
    global _single_buffer_ok
    kparams = tuple((w, b) for (w, b) in kparams)
    if _single_buffer_ok:
        try:
            out = _nn_forward_impl(x, kparams, single_buffer=True)
            return jax.block_until_ready(out)
        except Exception:
            # This JAX/Mosaic version rejected pipeline_mode=pl.Buffered(1);
            # fall back to default (double-buffered) resident weights.
            _single_buffer_ok = False
    return _nn_forward_impl(x, kparams, single_buffer=False)


def reference_forward(x, params):
    """Pure-JAX reference with the same bf16-operand / f32-accumulate numerics."""
    h = x
    for i, (w, b) in enumerate(params):
        h = jnp.dot(h.astype(jnp.bfloat16), w.astype(jnp.bfloat16),
                    preferred_element_type=jnp.float32) + b
        if i < len(params) - 1:
            h = jnp.maximum(h, 0.0)
    return h


if __name__ == "__main__":
    input_dim, hidden_dim, output_dim = 16, 32, 4
    batch = 8

    key = jax.random.PRNGKey(0)
    key, kx = jax.random.split(key)
    x = jax.random.normal(kx, (batch, input_dim), jnp.float32)

    params = init_params(key, input_dim, hidden_dim, output_dim)
    kparams = prepare_params(params)

    out = nn_forward(x, kparams)
    out = jax.block_until_ready(out)

    ref = reference_forward(x, params)
    assert out.shape == (batch, output_dim), out.shape
    max_err = jnp.max(jnp.abs(out - ref))
    assert jnp.allclose(out, ref, atol=1e-2, rtol=1e-2), f"max abs err {max_err}"

    print("KERNEL_OK")
</pallas_src>

<mosaic_0001>
module attributes {stable_mosaic.version = 11 : i64} {
  func.func @_mlp_group_kernel(%arg0: i32, %arg1: memref<8x16xf32, #tpu.memory_space<vmem>>, %arg2: memref<16x128xbf16, #tpu.memory_space<vmem>>, %arg3: memref<1x128xf32, #tpu.memory_space<vmem>>, %arg4: memref<128x128xbf16, #tpu.memory_space<vmem>>, %arg5: memref<1x128xf32, #tpu.memory_space<vmem>>, %arg6: memref<128x128xbf16, #tpu.memory_space<vmem>>, %arg7: memref<1x128xf32, #tpu.memory_space<vmem>>, %arg8: memref<128x128xbf16, #tpu.memory_space<vmem>>, %arg9: memref<1x128xf32, #tpu.memory_space<vmem>>, %arg10: memref<128x128xbf16, #tpu.memory_space<vmem>>, %arg11: memref<1x128xf32, #tpu.memory_space<vmem>>, %arg12: memref<128x128xbf16, #tpu.memory_space<vmem>>, %arg13: memref<1x128xf32, #tpu.memory_space<vmem>>, %arg14: memref<128x128xbf16, #tpu.memory_space<vmem>>, %arg15: memref<1x128xf32, #tpu.memory_space<vmem>>, %arg16: memref<128x4xbf16, #tpu.memory_space<vmem>>, %arg17: memref<1x4xf32, #tpu.memory_space<vmem>>, %arg18: memref<8x4xf32, #tpu.memory_space<vmem>>) attributes {dimension_semantics = [#tpu.dimension_semantics<parallel>], iteration_bounds = array<i64: 1>, scalar_prefetch = 0 : i64, scratch_operands = 0 : i64, tpu.core_type = #tpu.core_type<tc>, window_params = [{transform_indices = @transform_0, window_bounds = array<i64: 8, 16>}, {pipeline_mode = #tpu.pipeline_mode<synchronous>, transform_indices = @transform_1, window_bounds = array<i64: 16, 128>}, {pipeline_mode = #tpu.pipeline_mode<synchronous>, transform_indices = @transform_2, window_bounds = array<i64: 1, 128>}, {pipeline_mode = #tpu.pipeline_mode<synchronous>, transform_indices = @transform_3, window_bounds = array<i64: 128, 128>}, {pipeline_mode = #tpu.pipeline_mode<synchronous>, transform_indices = @transform_4, window_bounds = array<i64: 1, 128>}, {pipeline_mode = #tpu.pipeline_mode<synchronous>, transform_indices = @transform_5, window_bounds = array<i64: 128, 128>}, {pipeline_mode = #tpu.pipeline_mode<synchronous>, transform_indices = @transform_6, window_bounds = array<i64: 1, 128>}, {pipeline_mode = #tpu.pipeline_mode<synchronous>, transform_indices = @transform_7, window_bounds = array<i64: 128, 128>}, {pipeline_mode = #tpu.pipeline_mode<synchronous>, transform_indices = @transform_8, window_bounds = array<i64: 1, 128>}, {pipeline_mode = #tpu.pipeline_mode<synchronous>, transform_indices = @transform_9, window_bounds = array<i64: 128, 128>}, {pipeline_mode = #tpu.pipeline_mode<synchronous>, transform_indices = @transform_10, window_bounds = array<i64: 1, 128>}, {pipeline_mode = #tpu.pipeline_mode<synchronous>, transform_indices = @transform_11, window_bounds = array<i64: 128, 128>}, {pipeline_mode = #tpu.pipeline_mode<synchronous>, transform_indices = @transform_12, window_bounds = array<i64: 1, 128>}, {pipeline_mode = #tpu.pipeline_mode<synchronous>, transform_indices = @transform_13, window_bounds = array<i64: 128, 128>}, {pipeline_mode = #tpu.pipeline_mode<synchronous>, transform_indices = @transform_14, window_bounds = array<i64: 1, 128>}, {pipeline_mode = #tpu.pipeline_mode<synchronous>, transform_indices = @transform_15, window_bounds = array<i64: 128, 4>}, {pipeline_mode = #tpu.pipeline_mode<synchronous>, transform_indices = @transform_16, window_bounds = array<i64: 1, 4>}, {transform_indices = @transform_17, window_bounds = array<i64: 8, 4>}]} {
    %c0 = arith.constant 0 : index
    %c0_0 = arith.constant 0 : index
    %0 = vector.load %arg1[%c0, %c0_0] : memref<8x16xf32, #tpu.memory_space<vmem>>, vector<8x16xf32>
    %1 = arith.truncf %0 : vector<8x16xf32> to vector<8x16xbf16>
    %c0_1 = arith.constant 0 : index
    %c0_2 = arith.constant 0 : index
    %2 = vector.load %arg2[%c0_1, %c0_2] : memref<16x128xbf16, #tpu.memory_space<vmem>>, vector<16x128xbf16>
    %cst = arith.constant dense<0.000000e+00> : vector<8x128xf32>
    %3 = tpu.matmul %1, %2, %cst {dimension_numbers = #tpu.dot_dimension_numbers<[1], [0], [0], [1], [0, 0, 1, 1], [], []>} : vector<8x16xbf16>, vector<16x128xbf16>, vector<8x128xf32> -> vector<8x128xf32>
    %c0_3 = arith.constant 0 : index
    %c0_4 = arith.constant 0 : index
    %4 = vector.load %arg3[%c0_3, %c0_4] : memref<1x128xf32, #tpu.memory_space<vmem>>, vector<1x128xf32>
    %5 = vector.broadcast %4 : vector<1x128xf32> to vector<8x128xf32>
    %6 = arith.addf %3, %5 : vector<8x128xf32>
    %cst_5 = arith.constant 0.000000e+00 : f32
    %7 = vector.broadcast %cst_5 : f32 to vector<8x128xf32>
    %8 = arith.maximumf %6, %7 : vector<8x128xf32>
    %9 = arith.truncf %8 : vector<8x128xf32> to vector<8x128xbf16>
    %c0_6 = arith.constant 0 : index
    %c0_7 = arith.constant 0 : index
    %10 = vector.load %arg4[%c0_6, %c0_7] : memref<128x128xbf16, #tpu.memory_space<vmem>>, vector<128x128xbf16>
    %cst_8 = arith.constant dense<0.000000e+00> : vector<8x128xf32>
    %11 = tpu.matmul %9, %10, %cst_8 {dimension_numbers = #tpu.dot_dimension_numbers<[1], [0], [0], [1], [0, 0, 1, 1], [], []>} : vector<8x128xbf16>, vector<128x128xbf16>, vector<8x128xf32> -> vector<8x128xf32>
    %c0_9 = arith.constant 0 : index
    %c0_10 = arith.constant 0 : index
    %12 = vector.load %arg5[%c0_9, %c0_10] : memref<1x128xf32, #tpu.memory_space<vmem>>, vector<1x128xf32>
    %13 = vector.broadcast %12 : vector<1x128xf32> to vector<8x128xf32>
    %14 = arith.addf %11, %13 : vector<8x128xf32>
    %cst_11 = arith.constant 0.000000e+00 : f32
    %15 = vector.broadcast %cst_11 : f32 to vector<8x128xf32>
    %16 = arith.maximumf %14, %15 : vector<8x128xf32>
    %17 = arith.truncf %16 : vector<8x128xf32> to vector<8x128xbf16>
    %c0_12 = arith.constant 0 : index
    %c0_13 = arith.constant 0 : index
    %18 = vector.load %arg6[%c0_12, %c0_13] : memref<128x128xbf16, #tpu.memory_space<vmem>>, vector<128x128xbf16>
    %cst_14 = arith.constant dense<0.000000e+00> : vector<8x128xf32>
    %19 = tpu.matmul %17, %18, %cst_14 {dimension_numbers = #tpu.dot_dimension_numbers<[1], [0], [0], [1], [0, 0, 1, 1], [], []>} : vector<8x128xbf16>, vector<128x128xbf16>, vector<8x128xf32> -> vector<8x128xf32>
    %c0_15 = arith.constant 0 : index
    %c0_16 = arith.constant 0 : index
    %20 = vector.load %arg7[%c0_15, %c0_16] : memref<1x128xf32, #tpu.memory_space<vmem>>, vector<1x128xf32>
    %21 = vector.broadcast %20 : vector<1x128xf32> to vector<8x128xf32>
    %22 = arith.addf %19, %21 : vector<8x128xf32>
    %cst_17 = arith.constant 0.000000e+00 : f32
    %23 = vector.broadcast %cst_17 : f32 to vector<8x128xf32>
    %24 = arith.maximumf %22, %23 : vector<8x128xf32>
    %25 = arith.truncf %24 : vector<8x128xf32> to vector<8x128xbf16>
    %c0_18 = arith.constant 0 : index
    %c0_19 = arith.constant 0 : index
    %26 = vector.load %arg8[%c0_18, %c0_19] : memref<128x128xbf16, #tpu.memory_space<vmem>>, vector<128x128xbf16>
    %cst_20 = arith.constant dense<0.000000e+00> : vector<8x128xf32>
    %27 = tpu.matmul %25, %26, %cst_20 {dimension_numbers = #tpu.dot_dimension_numbers<[1], [0], [0], [1], [0, 0, 1, 1], [], []>} : vector<8x128xbf16>, vector<128x128xbf16>, vector<8x128xf32> -> vector<8x128xf32>
    %c0_21 = arith.constant 0 : index
    %c0_22 = arith.constant 0 : index
    %28 = vector.load %arg9[%c0_21, %c0_22] : memref<1x128xf32, #tpu.memory_space<vmem>>, vector<1x128xf32>
    %29 = vector.broadcast %28 : vector<1x128xf32> to vector<8x128xf32>
    %30 = arith.addf %27, %29 : vector<8x128xf32>
    %cst_23 = arith.constant 0.000000e+00 : f32
    %31 = vector.broadcast %cst_23 : f32 to vector<8x128xf32>
    %32 = arith.maximumf %30, %31 : vector<8x128xf32>
    %33 = arith.truncf %32 : vector<8x128xf32> to vector<8x128xbf16>
    %c0_24 = arith.constant 0 : index
    %c0_25 = arith.constant 0 : index
    %34 = vector.load %arg10[%c0_24, %c0_25] : memref<128x128xbf16, #tpu.memory_space<vmem>>, vector<128x128xbf16>
    %cst_26 = arith.constant dense<0.000000e+00> : vector<8x128xf32>
    %35 = tpu.matmul %33, %34, %cst_26 {dimension_numbers = #tpu.dot_dimension_numbers<[1], [0], [0], [1], [0, 0, 1, 1], [], []>} : vector<8x128xbf16>, vector<128x128xbf16>, vector<8x128xf32> -> vector<8x128xf32>
    %c0_27 = arith.constant 0 : index
    %c0_28 = arith.constant 0 : index
    %36 = vector.load %arg11[%c0_27, %c0_28] : memref<1x128xf32, #tpu.memory_space<vmem>>, vector<1x128xf32>
    %37 = vector.broadcast %36 : vector<1x128xf32> to vector<8x128xf32>
    %38 = arith.addf %35, %37 : vector<8x128xf32>
    %cst_29 = arith.constant 0.000000e+00 : f32
    %39 = vector.broadcast %cst_29 : f32 to vector<8x128xf32>
    %40 = arith.maximumf %38, %39 : vector<8x128xf32>
    %41 = arith.truncf %40 : vector<8x128xf32> to vector<8x128xbf16>
    %c0_30 = arith.constant 0 : index
    %c0_31 = arith.constant 0 : index
    %42 = vector.load %arg12[%c0_30, %c0_31] : memref<128x128xbf16, #tpu.memory_space<vmem>>, vector<128x128xbf16>
    %cst_32 = arith.constant dense<0.000000e+00> : vector<8x128xf32>
    %43 = tpu.matmul %41, %42, %cst_32 {dimension_numbers = #tpu.dot_dimension_numbers<[1], [0], [0], [1], [0, 0, 1, 1], [], []>} : vector<8x128xbf16>, vector<128x128xbf16>, vector<8x128xf32> -> vector<8x128xf32>
    %c0_33 = arith.constant 0 : index
    %c0_34 = arith.constant 0 : index
    %44 = vector.load %arg13[%c0_33, %c0_34] : memref<1x128xf32, #tpu.memory_space<vmem>>, vector<1x128xf32>
    %45 = vector.broadcast %44 : vector<1x128xf32> to vector<8x128xf32>
    %46 = arith.addf %43, %45 : vector<8x128xf32>
    %cst_35 = arith.constant 0.000000e+00 : f32
    %47 = vector.broadcast %cst_35 : f32 to vector<8x128xf32>
    %48 = arith.maximumf %46, %47 : vector<8x128xf32>
    %49 = arith.truncf %48 : vector<8x128xf32> to vector<8x128xbf16>
    %c0_36 = arith.constant 0 : index
    %c0_37 = arith.constant 0 : index
    %50 = vector.load %arg14[%c0_36, %c0_37] : memref<128x128xbf16, #tpu.memory_space<vmem>>, vector<128x128xbf16>
    %cst_38 = arith.constant dense<0.000000e+00> : vector<8x128xf32>
    %51 = tpu.matmul %49, %50, %cst_38 {dimension_numbers = #tpu.dot_dimension_numbers<[1], [0], [0], [1], [0, 0, 1, 1], [], []>} : vector<8x128xbf16>, vector<128x128xbf16>, vector<8x128xf32> -> vector<8x128xf32>
    %c0_39 = arith.constant 0 : index
    %c0_40 = arith.constant 0 : index
    %52 = vector.load %arg15[%c0_39, %c0_40] : memref<1x128xf32, #tpu.memory_space<vmem>>, vector<1x128xf32>
    %53 = vector.broadcast %52 : vector<1x128xf32> to vector<8x128xf32>
    %54 = arith.addf %51, %53 : vector<8x128xf32>
    %cst_41 = arith.constant 0.000000e+00 : f32
    %55 = vector.broadcast %cst_41 : f32 to vector<8x128xf32>
    %56 = arith.maximumf %54, %55 : vector<8x128xf32>
    %57 = arith.truncf %56 : vector<8x128xf32> to vector<8x128xbf16>
    %c0_42 = arith.constant 0 : index
    %c0_43 = arith.constant 0 : index
    %58 = vector.load %arg16[%c0_42, %c0_43] : memref<128x4xbf16, #tpu.memory_space<vmem>>, vector<128x4xbf16>
    %cst_44 = arith.constant dense<0.000000e+00> : vector<8x4xf32>
    %59 = tpu.matmul %57, %58, %cst_44 {dimension_numbers = #tpu.dot_dimension_numbers<[1], [0], [0], [1], [0, 0, 1, 1], [], []>} : vector<8x128xbf16>, vector<128x4xbf16>, vector<8x4xf32> -> vector<8x4xf32>
    %c0_45 = arith.constant 0 : index
    %c0_46 = arith.constant 0 : index
    %60 = vector.load %arg17[%c0_45, %c0_46] : memref<1x4xf32, #tpu.memory_space<vmem>>, vector<1x4xf32>
    %61 = vector.broadcast %60 : vector<1x4xf32> to vector<8x4xf32>
    %62 = arith.addf %59, %61 : vector<8x4xf32>
    %c0_47 = arith.constant 0 : index
    %c0_48 = arith.constant 0 : index
    %63 = vector.load %arg18[%c0_47, %c0_48] : memref<8x4xf32, #tpu.memory_space<vmem>>, vector<8x4xf32>
    tpu.vector_store %arg18[%c0_47, %c0_48], %62 {strides = array<i32>} : memref<8x4xf32, #tpu.memory_space<vmem>>, vector<8x4xf32>,
    return
  }
  func.func @transform_0(%arg0: i32) -> (i32, i32) {
    %c0_i32 = arith.constant 0 : i32
    %c0_i32_0 = arith.constant 0 : i32
    return %arg0, %c0_i32 : i32, i32
  }
  func.func @transform_1(%arg0: i32) -> (i32, i32) {
    %c0_i32 = arith.constant 0 : i32
    %c0_i32_0 = arith.constant 0 : i32
    %c0_i32_1 = arith.constant 0 : i32
    return %c0_i32, %c0_i32_0 : i32, i32
  }
  func.func @transform_2(%arg0: i32) -> (i32, i32) {
    %c0_i32 = arith.constant 0 : i32
    %c0_i32_0 = arith.constant 0 : i32
    %c0_i32_1 = arith.constant 0 : i32
    return %c0_i32, %c0_i32_0 : i32, i32
  }
  func.func @transform_3(%arg0: i32) -> (i32, i32) {
    %c0_i32 = arith.constant 0 : i32
    %c0_i32_0 = arith.constant 0 : i32
    %c0_i32_1 = arith.constant 0 : i32
    return %c0_i32, %c0_i32_0 : i32, i32
  }
  func.func @transform_4(%arg0: i32) -> (i32, i32) {
    %c0_i32 = arith.constant 0 : i32
    %c0_i32_0 = arith.constant 0 : i32
    %c0_i32_1 = arith.constant 0 : i32
    return %c0_i32, %c0_i32_0 : i32, i32
  }
  func.func @transform_5(%arg0: i32) -> (i32, i32) {
    %c0_i32 = arith.constant 0 : i32
    %c0_i32_0 = arith.constant 0 : i32
    %c0_i32_1 = arith.constant 0 : i32
    return %c0_i32, %c0_i32_0 : i32, i32
  }
  func.func @transform_6(%arg0: i32) -> (i32, i32) {
    %c0_i32 = arith.constant 0 : i32
    %c0_i32_0 = arith.constant 0 : i32
    %c0_i32_1 = arith.constant 0 : i32
    return %c0_i32, %c0_i32_0 : i32, i32
  }
  func.func @transform_7(%arg0: i32) -> (i32, i32) {
    %c0_i32 = arith.constant 0 : i32
    %c0_i32_0 = arith.constant 0 : i32
    %c0_i32_1 = arith.constant 0 : i32
    return %c0_i32, %c0_i32_0 : i32, i32
  }
  func.func @transform_8(%arg0: i32) -> (i32, i32) {
    %c0_i32 = arith.constant 0 : i32
    %c0_i32_0 = arith.constant 0 : i32
    %c0_i32_1 = arith.constant 0 : i32
    return %c0_i32, %c0_i32_0 : i32, i32
  }
  func.func @transform_9(%arg0: i32) -> (i32, i32) {
    %c0_i32 = arith.constant 0 : i32
    %c0_i32_0 = arith.constant 0 : i32
    %c0_i32_1 = arith.constant 0 : i32
    return %c0_i32, %c0_i32_0 : i32, i32
  }
  func.func @transform_10(%arg0: i32) -> (i32, i32) {
    %c0_i32 = arith.constant 0 : i32
    %c0_i32_0 = arith.constant 0 : i32
    %c0_i32_1 = arith.constant 0 : i32
    return %c0_i32, %c0_i32_0 : i32, i32
  }
  func.func @transform_11(%arg0: i32) -> (i32, i32) {
    %c0_i32 = arith.constant 0 : i32
    %c0_i32_0 = arith.constant 0 : i32
    %c0_i32_1 = arith.constant 0 : i32
    return %c0_i32, %c0_i32_0 : i32, i32
  }
  func.func @transform_12(%arg0: i32) -> (i32, i32) {
    %c0_i32 = arith.constant 0 : i32
    %c0_i32_0 = arith.constant 0 : i32
    %c0_i32_1 = arith.constant 0 : i32
    return %c0_i32, %c0_i32_0 : i32, i32
  }
  func.func @transform_13(%arg0: i32) -> (i32, i32) {
    %c0_i32 = arith.constant 0 : i32
    %c0_i32_0 = arith.constant 0 : i32
    %c0_i32_1 = arith.constant 0 : i32
    return %c0_i32, %c0_i32_0 : i32, i32
  }
  func.func @transform_14(%arg0: i32) -> (i32, i32) {
    %c0_i32 = arith.constant 0 : i32
    %c0_i32_0 = arith.constant 0 : i32
    %c0_i32_1 = arith.constant 0 : i32
    return %c0_i32, %c0_i32_0 : i32, i32
  }
  func.func @transform_15(%arg0: i32) -> (i32, i32) {
    %c0_i32 = arith.constant 0 : i32
    %c0_i32_0 = arith.constant 0 : i32
    %c0_i32_1 = arith.constant 0 : i32
    return %c0_i32, %c0_i32_0 : i32, i32
  }
  func.func @transform_16(%arg0: i32) -> (i32, i32) {
    %c0_i32 = arith.constant 0 : i32
    %c0_i32_0 = arith.constant 0 : i32
    %c0_i32_1 = arith.constant 0 : i32
    return %c0_i32, %c0_i32_0 : i32, i32
  }
  func.func @transform_17(%arg0: i32) -> (i32, i32) {
    %c0_i32 = arith.constant 0 : i32
    %c0_i32_0 = arith.constant 0 : i32
    return %arg0, %c0_i32 : i32, i32
  }
}

module attributes {stable_mosaic.version = 11 : i64} {
  func.func @_mlp_group_kernel(%arg0: i32, %arg1: memref<8x16xf32, #tpu.memory_space<vmem>>, %arg2: memref<16x128xbf16, #tpu.memory_space<vmem>>, %arg3: memref<1x128xf32, #tpu.memory_space<vmem>>, %arg4: memref<128x128xbf16, #tpu.memory_space<vmem>>, %arg5: memref<1x128xf32, #tpu.memory_space<vmem>>, %arg6: memref<128x128xbf16, #tpu.memory_space<vmem>>, %arg7: memref<1x128xf32, #tpu.memory_space<vmem>>, %arg8: memref<128x128xbf16, #tpu.memory_space<vmem>>, %arg9: memref<1x128xf32, #tpu.memory_space<vmem>>, %arg10: memref<128x128xbf16, #tpu.memory_space<vmem>>, %arg11: memref<1x128xf32, #tpu.memory_space<vmem>>, %arg12: memref<128x128xbf16, #tpu.memory_space<vmem>>, %arg13: memref<1x128xf32, #tpu.memory_space<vmem>>, %arg14: memref<128x128xbf16, #tpu.memory_space<vmem>>, %arg15: memref<1x128xf32, #tpu.memory_space<vmem>>, %arg16: memref<128x4xbf16, #tpu.memory_space<vmem>>, %arg17: memref<1x4xf32, #tpu.memory_space<vmem>>, %arg18: memref<8x4xf32, #tpu.memory_space<vmem>>) attributes {dimension_semantics = [#tpu.dimension_semantics<parallel>], iteration_bounds = array<i64: 1>, scalar_prefetch = 0 : i64, scratch_operands = 0 : i64, tpu.core_type = #tpu.core_type<tc>, window_params = [{transform_indices = @transform_0, window_bounds = array<i64: 8, 16>}, {pipeline_mode = #tpu.pipeline_mode<synchronous>, transform_indices = @transform_1, window_bounds = array<i64: 16, 128>}, {pipeline_mode = #tpu.pipeline_mode<synchronous>, transform_indices = @transform_2, window_bounds = array<i64: 1, 128>}, {pipeline_mode = #tpu.pipeline_mode<synchronous>, transform_indices = @transform_3, window_bounds = array<i64: 128, 128>}, {pipeline_mode = #tpu.pipeline_mode<synchronous>, transform_indices = @transform_4, window_bounds = array<i64: 1, 128>}, {pipeline_mode = #tpu.pipeline_mode<synchronous>, transform_indices = @transform_5, window_bounds = array<i64: 128, 128>}, {pipeline_mode = #tpu.pipeline_mode<synchronous>, transform_indices = @transform_6, window_bounds = array<i64: 1, 128>}, {pipeline_mode = #tpu.pipeline_mode<synchronous>, transform_indices = @transform_7, window_bounds = array<i64: 128, 128>}, {pipeline_mode = #tpu.pipeline_mode<synchronous>, transform_indices = @transform_8, window_bounds = array<i64: 1, 128>}, {pipeline_mode = #tpu.pipeline_mode<synchronous>, transform_indices = @transform_9, window_bounds = array<i64: 128, 128>}, {pipeline_mode = #tpu.pipeline_mode<synchronous>, transform_indices = @transform_10, window_bounds = array<i64: 1, 128>}, {pipeline_mode = #tpu.pipeline_mode<synchronous>, transform_indices = @transform_11, window_bounds = array<i64: 128, 128>}, {pipeline_mode = #tpu.pipeline_mode<synchronous>, transform_indices = @transform_12, window_bounds = array<i64: 1, 128>}, {pipeline_mode = #tpu.pipeline_mode<synchronous>, transform_indices = @transform_13, window_bounds = array<i64: 128, 128>}, {pipeline_mode = #tpu.pipeline_mode<synchronous>, transform_indices = @transform_14, window_bounds = array<i64: 1, 128>}, {pipeline_mode = #tpu.pipeline_mode<synchronous>, transform_indices = @transform_15, window_bounds = array<i64: 128, 4>}, {pipeline_mode = #tpu.pipeline_mode<synchronous>, transform_indices = @transform_16, window_bounds = array<i64: 1, 4>}, {transform_indices = @transform_17, window_bounds = array<i64: 8, 4>}]} {
    %c0 = arith.constant 0 : index
    %c0_0 = arith.constant 0 : index
    %0 = vector.load %arg1[%c0, %c0_0] : memref<8x16xf32, #tpu.memory_space<vmem>>, vector<8x16xf32>
    %1 = arith.truncf %0 : vector<8x16xf32> to vector<8x16xbf16>
    %c0_1 = arith.constant 0 : index
    %c0_2 = arith.constant 0 : index
    %2 = vector.load %arg2[%c0_1, %c0_2] : memref<16x128xbf16, #tpu.memory_space<vmem>>, vector<16x128xbf16>
    %cst = arith.constant dense<0.000000e+00> : vector<8x128xf32>
    %3 = tpu.matmul %1, %2, %cst {dimension_numbers = #tpu.dot_dimension_numbers<[1], [0], [0], [1], [0, 0, 1, 1], [], []>} : vector<8x16xbf16>, vector<16x128xbf16>, vector<8x128xf32> -> vector<8x128xf32>
    %c0_3 = arith.constant 0 : index
    %c0_4 = arith.constant 0 : index
    %4 = vector.load %arg3[%c0_3, %c0_4] : memref<1x128xf32, #tpu.memory_space<vmem>>, vector<1x128xf32>
    %5 = vector.broadcast %4 : vector<1x128xf32> to vector<8x128xf32>
    %6 = arith.addf %3, %5 : vector<8x128xf32>
    %cst_5 = arith.constant 0.000000e+00 : f32
    %7 = vector.broadcast %cst_5 : f32 to vector<8x128xf32>
    %8 = arith.maximumf %6, %7 : vector<8x128xf32>
    %9 = arith.truncf %8 : vector<8x128xf32> to vector<8x128xbf16>
    %c0_6 = arith.constant 0 : index
    %c0_7 = arith.constant 0 : index
    %10 = vector.load %arg4[%c0_6, %c0_7] : memref<128x128xbf16, #tpu.memory_space<vmem>>, vector<128x128xbf16>
    %cst_8 = arith.constant dense<0.000000e+00> : vector<8x128xf32>
    %11 = tpu.matmul %9, %10, %cst_8 {dimension_numbers = #tpu.dot_dimension_numbers<[1], [0], [0], [1], [0, 0, 1, 1], [], []>} : vector<8x128xbf16>, vector<128x128xbf16>, vector<8x128xf32> -> vector<8x128xf32>
    %c0_9 = arith.constant 0 : index
    %c0_10 = arith.constant 0 : index
    %12 = vector.load %arg5[%c0_9, %c0_10] : memref<1x128xf32, #tpu.memory_space<vmem>>, vector<1x128xf32>
    %13 = vector.broadcast %12 : vector<1x128xf32> to vector<8x128xf32>
    %14 = arith.addf %11, %13 : vector<8x128xf32>
    %cst_11 = arith.constant 0.000000e+00 : f32
    %15 = vector.broadcast %cst_11 : f32 to vector<8x128xf32>
    %16 = arith.maximumf %14, %15 : vector<8x128xf32>
    %17 = arith.truncf %16 : vector<8x128xf32> to vector<8x128xbf16>
    %c0_12 = arith.constant 0 : index
    %c0_13 = arith.constant 0 : index
    %18 = vector.load %arg6[%c0_12, %c0_13] : memref<128x128xbf16, #tpu.memory_space<vmem>>, vector<128x128xbf16>
    %cst_14 = arith.constant dense<0.000000e+00> : vector<8x128xf32>
    %19 = tpu.matmul %17, %18, %cst_14 {dimension_numbers = #tpu.dot_dimension_numbers<[1], [0], [0], [1], [0, 0, 1, 1], [], []>} : vector<8x128xbf16>, vector<128x128xbf16>, vector<8x128xf32> -> vector<8x128xf32>
    %c0_15 = arith.constant 0 : index
    %c0_16 = arith.constant 0 : index
    %20 = vector.load %arg7[%c0_15, %c0_16] : memref<1x128xf32, #tpu.memory_space<vmem>>, vector<1x128xf32>
    %21 = vector.broadcast %20 : vector<1x128xf32> to vector<8x128xf32>
    %22 = arith.addf %19, %21 : vector<8x128xf32>
    %cst_17 = arith.constant 0.000000e+00 : f32
    %23 = vector.broadcast %cst_17 : f32 to vector<8x128xf32>
    %24 = arith.maximumf %22, %23 : vector<8x128xf32>
    %25 = arith.truncf %24 : vector<8x128xf32> to vector<8x128xbf16>
    %c0_18 = arith.constant 0 : index
    %c0_19 = arith.constant 0 : index
    %26 = vector.load %arg8[%c0_18, %c0_19] : memref<128x128xbf16, #tpu.memory_space<vmem>>, vector<128x128xbf16>
    %cst_20 = arith.constant dense<0.000000e+00> : vector<8x128xf32>
    %27 = tpu.matmul %25, %26, %cst_20 {dimension_numbers = #tpu.dot_dimension_numbers<[1], [0], [0], [1], [0, 0, 1, 1], [], []>} : vector<8x128xbf16>, vector<128x128xbf16>, vector<8x128xf32> -> vector<8x128xf32>
    %c0_21 = arith.constant 0 : index
    %c0_22 = arith.constant 0 : index
    %28 = vector.load %arg9[%c0_21, %c0_22] : memref<1x128xf32, #tpu.memory_space<vmem>>, vector<1x128xf32>
    %29 = vector.broadcast %28 : vector<1x128xf32> to vector<8x128xf32>
    %30 = arith.addf %27, %29 : vector<8x128xf32>
    %cst_23 = arith.constant 0.000000e+00 : f32
    %31 = vector.broadcast %cst_23 : f32 to vector<8x128xf32>
    %32 = arith.maximumf %30, %31 : vector<8x128xf32>
    %33 = arith.truncf %32 : vector<8x128xf32> to vector<8x128xbf16>
    %c0_24 = arith.constant 0 : index
    %c0_25 = arith.constant 0 : index
    %34 = vector.load %arg10[%c0_24, %c0_25] : memref<128x128xbf16, #tpu.memory_space<vmem>>, vector<128x128xbf16>
    %cst_26 = arith.constant dense<0.000000e+00> : vector<8x128xf32>
    %35 = tpu.matmul %33, %34, %cst_26 {dimension_numbers = #tpu.dot_dimension_numbers<[1], [0], [0], [1], [0, 0, 1, 1], [], []>} : vector<8x128xbf16>, vector<128x128xbf16>, vector<8x128xf32> -> vector<8x128xf32>
    %c0_27 = arith.constant 0 : index
    %c0_28 = arith.constant 0 : index
    %36 = vector.load %arg11[%c0_27, %c0_28] : memref<1x128xf32, #tpu.memory_space<vmem>>, vector<1x128xf32>
    %37 = vector.broadcast %36 : vector<1x128xf32> to vector<8x128xf32>
    %38 = arith.addf %35, %37 : vector<8x128xf32>
    %cst_29 = arith.constant 0.000000e+00 : f32
    %39 = vector.broadcast %cst_29 : f32 to vector<8x128xf32>
    %40 = arith.maximumf %38, %39 : vector<8x128xf32>
    %41 = arith.truncf %40 : vector<8x128xf32> to vector<8x128xbf16>
    %c0_30 = arith.constant 0 : index
    %c0_31 = arith.constant 0 : index
    %42 = vector.load %arg12[%c0_30, %c0_31] : memref<128x128xbf16, #tpu.memory_space<vmem>>, vector<128x128xbf16>
    %cst_32 = arith.constant dense<0.000000e+00> : vector<8x128xf32>
    %43 = tpu.matmul %41, %42, %cst_32 {dimension_numbers = #tpu.dot_dimension_numbers<[1], [0], [0], [1], [0, 0, 1, 1], [], []>} : vector<8x128xbf16>, vector<128x128xbf16>, vector<8x128xf32> -> vector<8x128xf32>
    %c0_33 = arith.constant 0 : index
    %c0_34 = arith.constant 0 : index
    %44 = vector.load %arg13[%c0_33, %c0_34] : memref<1x128xf32, #tpu.memory_space<vmem>>, vector<1x128xf32>
    %45 = vector.broadcast %44 : vector<1x128xf32> to vector<8x128xf32>
    %46 = arith.addf %43, %45 : vector<8x128xf32>
    %cst_35 = arith.constant 0.000000e+00 : f32
    %47 = vector.broadcast %cst_35 : f32 to vector<8x128xf32>
    %48 = arith.maximumf %46, %47 : vector<8x128xf32>
    %49 = arith.truncf %48 : vector<8x128xf32> to vector<8x128xbf16>
    %c0_36 = arith.constant 0 : index
    %c0_37 = arith.constant 0 : index
    %50 = vector.load %arg14[%c0_36, %c0_37] : memref<128x128xbf16, #tpu.memory_space<vmem>>, vector<128x128xbf16>
    %cst_38 = arith.constant dense<0.000000e+00> : vector<8x128xf32>
    %51 = tpu.matmul %49, %50, %cst_38 {dimension_numbers = #tpu.dot_dimension_numbers<[1], [0], [0], [1], [0, 0, 1, 1], [], []>} : vector<8x128xbf16>, vector<128x128xbf16>, vector<8x128xf32> -> vector<8x128xf32>
    %c0_39 = arith.constant 0 : index
    %c0_40 = arith.constant 0 : index
    %52 = vector.load %arg15[%c0_39, %c0_40] : memref<1x128xf32, #tpu.memory_space<vmem>>, vector<1x128xf32>
    %53 = vector.broadcast %52 : vector<1x128xf32> to vector<8x128xf32>
    %54 = arith.addf %51, %53 : vector<8x128xf32>
    %cst_41 = arith.constant 0.000000e+00 : f32
    %55 = vector.broadcast %cst_41 : f32 to vector<8x128xf32>
    %56 = arith.maximumf %54, %55 : vector<8x128xf32>
    %57 = arith.truncf %56 : vector<8x128xf32> to vector<8x128xbf16>
    %c0_42 = arith.constant 0 : index
    %c0_43 = arith.constant 0 : index
    %58 = vector.load %arg16[%c0_42, %c0_43] : memref<128x4xbf16, #tpu.memory_space<vmem>>, vector<128x4xbf16>
    %cst_44 = arith.constant dense<0.000000e+00> : vector<8x4xf32>
    %59 = tpu.matmul %57, %58, %cst_44 {dimension_numbers = #tpu.dot_dimension_numbers<[1], [0], [0], [1], [0, 0, 1, 1], [], []>} : vector<8x128xbf16>, vector<128x4xbf16>, vector<8x4xf32> -> vector<8x4xf32>
    %c0_45 = arith.constant 0 : index
    %c0_46 = arith.constant 0 : index
    %60 = vector.load %arg17[%c0_45, %c0_46] : memref<1x4xf32, #tpu.memory_space<vmem>>, vector<1x4xf32>
    %61 = vector.broadcast %60 : vector<1x4xf32> to vector<8x4xf32>
    %62 = arith.addf %59, %61 : vector<8x4xf32>
    %c0_47 = arith.constant 0 : index
    %c0_48 = arith.constant 0 : index
    %63 = vector.load %arg18[%c0_47, %c0_48] : memref<8x4xf32, #tpu.memory_space<vmem>>, vector<8x4xf32>
    tpu.vector_store %arg18[%c0_47, %c0_48], %62 {strides = array<i32>} : memref<8x4xf32, #tpu.memory_space<vmem>>, vector<8x4xf32>,
    return
  }
  func.func @transform_0(%arg0: i32) -> (i32, i32) {
    %c0_i32 = arith.constant 0 : i32
    %c0_i32_0 = arith.constant 0 : i32
    return %arg0, %c0_i32 : i32, i32
  }
  func.func @transform_1(%arg0: i32) -> (i32, i32) {
    %c0_i32 = arith.constant 0 : i32
    %c0_i32_0 = arith.constant 0 : i32
    %c0_i32_1 = arith.constant 0 : i32
    return %c0_i32, %c0_i32_0 : i32, i32
  }
  func.func @transform_2(%arg0: i32) -> (i32, i32) {
    %c0_i32 = arith.constant 0 : i32
    %c0_i32_0 = arith.constant 0 : i32
    %c0_i32_1 = arith.constant 0 : i32
    return %c0_i32, %c0_i32_0 : i32, i32
  }
  func.func @transform_3(%arg0: i32) -> (i32, i32) {
    %c0_i32 = arith.constant 0 : i32
    %c0_i32_0 = arith.constant 0 : i32
    %c0_i32_1 = arith.constant 0 : i32
    return %c0_i32, %c0_i32_0 : i32, i32
  }
  func.func @transform_4(%arg0: i32) -> (i32, i32) {
    %c0_i32 = arith.constant 0 : i32
    %c0_i32_0 = arith.constant 0 : i32
    %c0_i32_1 = arith.constant 0 : i32
    return %c0_i32, %c0_i32_0 : i32, i32
  }
  func.func @transform_5(%arg0: i32) -> (i32, i32) {
    %c0_i32 = arith.constant 0 : i32
    %c0_i32_0 = arith.constant 0 : i32
    %c0_i32_1 = arith.constant 0 : i32
    return %c0_i32, %c0_i32_0 : i32, i32
  }
  func.func @transform_6(%arg0: i32) -> (i32, i32) {
    %c0_i32 = arith.constant 0 : i32
    %c0_i32_0 = arith.constant 0 : i32
    %c0_i32_1 = arith.constant 0 : i32
    return %c0_i32, %c0_i32_0 : i32, i32
  }
  func.func @transform_7(%arg0: i32) -> (i32, i32) {
    %c0_i32 = arith.constant 0 : i32
    %c0_i32_0 = arith.constant 0 : i32
    %c0_i32_1 = arith.constant 0 : i32
    return %c0_i32, %c0_i32_0 : i32, i32
  }
  func.func @transform_8(%arg0: i32) -> (i32, i32) {
    %c0_i32 = arith.constant 0 : i32
    %c0_i32_0 = arith.constant 0 : i32
    %c0_i32_1 = arith.constant 0 : i32
    return %c0_i32, %c0_i32_0 : i32, i32
  }
  func.func @transform_9(%arg0: i32) -> (i32, i32) {
    %c0_i32 = arith.constant 0 : i32
    %c0_i32_0 = arith.constant 0 : i32
    %c0_i32_1 = arith.constant 0 : i32
    return %c0_i32, %c0_i32_0 : i32, i32
  }
  func.func @transform_10(%arg0: i32) -> (i32, i32) {
    %c0_i32 = arith.constant 0 : i32
    %c0_i32_0 = arith.constant 0 : i32
    %c0_i32_1 = arith.constant 0 : i32
    return %c0_i32, %c0_i32_0 : i32, i32
  }
  func.func @transform_11(%arg0: i32) -> (i32, i32) {
    %c0_i32 = arith.constant 0 : i32
    %c0_i32_0 = arith.constant 0 : i32
    %c0_i32_1 = arith.constant 0 : i32
    return %c0_i32, %c0_i32_0 : i32, i32
  }
  func.func @transform_12(%arg0: i32) -> (i32, i32) {
    %c0_i32 = arith.constant 0 : i32
    %c0_i32_0 = arith.constant 0 : i32
    %c0_i32_1 = arith.constant 0 : i32
    return %c0_i32, %c0_i32_0 : i32, i32
  }
  func.func @transform_13(%arg0: i32) -> (i32, i32) {
    %c0_i32 = arith.constant 0 : i32
    %c0_i32_0 = arith.constant 0 : i32
    %c0_i32_1 = arith.constant 0 : i32
    return %c0_i32, %c0_i32_0 : i32, i32
  }
  func.func @transform_14(%arg0: i32) -> (i32, i32) {
    %c0_i32 = arith.constant 0 : i32
    %c0_i32_0 = arith.constant 0 : i32
    %c0_i32_1 = arith.constant 0 : i32
    return %c0_i32, %c0_i32_0 : i32, i32
  }
  func.func @transform_15(%arg0: i32) -> (i32, i32) {
    %c0_i32 = arith.constant 0 : i32
    %c0_i32_0 = arith.constant 0 : i32
    %c0_i32_1 = arith.constant 0 : i32
    return %c0_i32, %c0_i32_0 : i32, i32
  }
  func.func @transform_16(%arg0: i32) -> (i32, i32) {
    %c0_i32 = arith.constant 0 : i32
    %c0_i32_0 = arith.constant 0 : i32
    %c0_i32_1 = arith.constant 0 : i32
    return %c0_i32, %c0_i32_0 : i32, i32
  }
  func.func @transform_17(%arg0: i32) -> (i32, i32) {
    %c0_i32 = arith.constant 0 : i32
    %c0_i32_0 = arith.constant 0 : i32
    return %arg0, %c0_i32 : i32, i32
  }
}

</mosaic_0001>

<bundles_post_ra>
// kernel: _nn_forward_impl.1
= control target key start
LH: loop header
LB: loop body
LE: loop exit
PB: predicated region body
PF: predicated region fallthrough
CT: control target
= control target key end

     0   :  { %s1478_s0 = inlined_call_operand.hbm [shape: f32[8,16], index: 0, kind: input, shape index: {}]   ;;  %s1479_s1 = inlined_call_operand.hbm [shape: bf16[16,128], index: 1, kind: input, shape index: {}]   ;;  %s1480_s2 = inlined_call_operand.vmem [shape: f32[1,128], index: 2, kind: input, shape index: {}]   ;;  %s1481_s3 = inlined_call_operand.vmem [shape: bf16[128,128], index: 3, kind: input, shape index: {}]   ;;  %s1482_s4 = inlined_call_operand.vmem [shape: f32[1,128], index: 4, kind: input, shape index: {}]   ;;  %s1483_s5 = inlined_call_operand.hbm [shape: bf16[128,128], index: 5, kind: input, shape index: {}]   ;;  %s1484_s6 = inlined_call_operand.vmem [shape: f32[1,128], index: 6, kind: input, shape index: {}]   ;;  %s1485_s7 = inlined_call_operand.hbm [shape: bf16[128,128], index: 7, kind: input, shape index: {}]   ;;  %s1486_s8 = inlined_call_operand.vmem [shape: f32[1,128], index: 8, kind: input, shape index: {}]   ;;  %s1487_s9 = inlined_call_operand.hbm [shape: bf16[128,128], index: 9, kind: input, shape index: {}]   ;;  %s1488_s10 = inlined_call_operand.vmem [shape: f32[1,128], index: 10, kind: input, shape index: {}]   ;;  %s1489_s11 = inlined_call_operand.hbm [shape: bf16[128,128], index: 11, kind: input, shape index: {}]   ;;  %s1490_s12 = inlined_call_operand.vmem [shape: f32[1,128], index: 12, kind: input, shape index: {}]   ;;  %s1491_s13 = inlined_call_operand.hbm [shape: bf16[128,128], index: 13, kind: input, shape index: {}]   ;;  %s1492_s14 = inlined_call_operand.vmem [shape: f32[1,128], index: 14, kind: input, shape index: {}]   ;;  %s1493_s15 = inlined_call_operand.vmem [shape: bf16[128,4], index: 15, kind: input, shape index: {}]   ;;  %s1494_s16 = inlined_call_operand.vmem [shape: f32[1,4], index: 16, kind: input, shape index: {}]   ;;  %s1495_s17 = inlined_call_operand.vmem [shape: f32[8,4], index: 17, kind: output, shape index: {}]  }
   0x1   :  { %1496 = sst [smem:[#allocation17_spill]] %s1478_s0 }
   0x2   :  { %1497 = sst [smem:[#allocation18_spill]] %s1479_s1 }
   0x3   :  { %22 = vsyncpa [#allocation3], 0 }
   0x4   :  { %23 = vsyncpa [#allocation5], 0 }
   0x5   :  { %24 = vsyncpa [#allocation8], 0  ;;  %s1498_s26 = sld [smem:[#allocation18_spill]] }
   0xb   :  { %s41_s27 = sshll.u32 %s1498_s26, 4  ;;  %s42_s27 = int_to_ptr.hbm [resolvable:$true] %s41_s27 }
   0xc   :  { %25 = vsyncpa [#allocation11], 0  ;;  %s1265_s28 = smov [#allocation4]   ;;  %s75_s18 = sshll.u32 %s1485_s7, 4  ;;  %s76_s18 = int_to_ptr.hbm [resolvable:$true] %s75_s18 }
   0xd   :  { %s43_s29 = sshll.u32 %s1265_s28, 4  ;;  %s1266_s19 = smov 64   ;;  %s44_s29 = int_to_ptr.vmem [resolvable:$true] %s43_s29 }
   0xe   :  { %s1267_s1 = smov 4   ;;  %s1268_s20 = smov [#allocation7]  }
   0xf   :  { %49 = dma.hbm_to_vmem [thread:$0]  %s42_s27, 128, %s44_s29, [#allocation5], %s1266_s19, %s1266_s19, %s1267_s1  }
  0x10   :  { %s77_s21 = sshll.u32 %s1268_s20, 4  ;;  %s105_s24 = sshll.u32 %s1489_s11, 4  ;;  %s78_s21 = int_to_ptr.vmem [resolvable:$true] %s77_s21  ;;  %s106_s24 = int_to_ptr.hbm [resolvable:$true] %s105_s24 }
  0x11   :  { %83 = dma.hbm_to_vmem [thread:$0]  %s76_s18, 1024, %s78_s21, [#allocation8], %s1266_s19, %s1266_s19, %s1267_s1  }
  0x12   :  { %s1499_s26 = sld [smem:[#allocation17_spill]]  ;;  %s1269_s0 = smov [#allocation10]  }
  0x13   :  { %s107_s30 = sshll.u32 %s1269_s0, 4  ;;  %s1270_s27 = smov [#allocation2]   ;;  %s108_s30 = int_to_ptr.vmem [resolvable:$true] %s107_s30 }
  0x14   :  { %113 = dma.hbm_to_vmem [thread:$0]  %s106_s24, 1024, %s108_s30, [#allocation11], %s1266_s19, %s1266_s19, %s1267_s1  }
  0x15   :  { %s33_s11 = sshll.u32 %s1270_s27, 4  ;;  %s60_s22 = sshll.u32 %s1483_s5, 4  ;;  %s34_s11 = int_to_ptr.vmem [resolvable:$true] %s33_s11  ;;  %s61_s22 = int_to_ptr.hbm [resolvable:$true] %s60_s22 }
  0x16   :  { %s90_s23 = sshll.u32 %s1487_s9, 4  ;;  %s1271_s7 = smov [#allocation6]   ;;  %s91_s23 = int_to_ptr.hbm [resolvable:$true] %s90_s23 }
  0x17   :  { %s62_s25 = sshll.u32 %s1271_s7, 4  ;;  %s1272_s24 = smov [#allocation9]   ;;  %s63_s25 = int_to_ptr.vmem [resolvable:$true] %s62_s25 }
  0x18   :  { %s31_s28 = sshll.u32 %s1499_s26, 4  ;;  %s92_s26 = sshll.u32 %s1272_s24, 4  ;;  %s32_s28 = int_to_ptr.hbm [resolvable:$true] %s31_s28  ;;  %s93_s26 = int_to_ptr.vmem [resolvable:$true] %s92_s26 }
  0x19   :  { %36 = dma.hbm_to_vmem [thread:$0]  %s32_s28, 128, %s34_s11, [#allocation3]  }
  0x1a   :  { %68 = dma.hbm_to_vmem [thread:$0]  %s61_s22, 1024, %s63_s25, [#allocation5], %s1266_s19, %s1266_s19, %s1267_s1  }
  0x1b   :  { %s120_s5 = sshll.u32 %s1491_s13, 4  ;;  %s1273_s9 = smov [#allocation12]   ;;  %s121_s5 = int_to_ptr.hbm [resolvable:$true] %s120_s5 }
  0x1c   :  { %98 = dma.hbm_to_vmem [thread:$0]  %s91_s23, 1024, %s93_s26, [#allocation8], %s1266_s19, %s1266_s19, %s1267_s1  }
  0x1d   :  { %s122_s28 = sshll.u32 %s1273_s9, 4  ;;  %s123_s28 = int_to_ptr.vmem [resolvable:$true] %s122_s28 }
  0x1e   :  { %128 = dma.hbm_to_vmem [thread:$0]  %s121_s5, 1024, %s123_s28, [#allocation11], %s1266_s19, %s1266_s19, %s1267_s1  }
  0x1f   :  { %1257 = dma.done.wait [#allocation3], 128  }
  0x20   :  { %1258 = vsyncadd [#allocation3], 4294967168 }
  0x21   :  { %1259 = dma.done.wait [#allocation5], 1152  }
  0x22   :  { %1260 = vsyncadd [#allocation5], 4294966144 }
  0x23   :  { %1261 = dma.done.wait [#allocation8], 2048  }
  0x24   :  { %1262 = vsyncadd [#allocation8], 4294965248 }
  0x25   :  { %1263 = dma.done.wait [#allocation11], 2048  }
  0x26   :  { %1264 = vsyncadd [#allocation11], 4294965248  ;;  %v1015_v0 = vld [vmem:[#allocation4] sm:$0xff]  ;;  %v164_v1 = vld [vmem:[#allocation2] sm:$0xff]  ;;  %vm178_vm0 = vcmask 130048   ;;  %vm776_vm1 = vcmask 31744  }
  0x27   :  { %v1023_v2 = vld [vmem:[%s1481_s3 + $0x38] sm:$0xff]  ;;  %v165_v3 = vpack.c.bf16 %v164_v1, %v164_v1  ;;  %189 = vmatpush.bf16.msra.mxu0 %v1015_v0  ;;  %v1022_v4 = vld [vmem:[%s1481_s3 + $0x30] sm:$0xff]  ;;  %v1021_v5 = vld [vmem:[%s1481_s3 + $0x28] sm:$0xff] }
  0x28   :  { %265 = vmatpush.bf16.msra.mxu1 %v1023_v2  ;;  %v1020_v6 = vld [vmem:[%s1481_s3 + $0x20] sm:$0xff]  ;;  %v1019_v7 = vld [vmem:[%s1481_s3 + $0x18] sm:$0xff]  ;;  %v1018_v8 = vld [vmem:[%s1481_s3 + $0x10] sm:$0xff] }
  0x29   :  { %v1017_v9 = vld [vmem:[%s1481_s3 + $0x8] sm:$0xff]  ;;  %v1016_v10 = vld [vmem:[%s1481_s3] sm:$0xff]  ;;  %v1029_v13 = vld [vmem:[#allocation6 + $0x28] sm:$0xff] }
  0x2a   :  { %790 = vmatmul.msk.bf16.vlgmr.msra.gmra.mxu0 %vm178_vm0, %v165_v3  ;;  %v1031_v11 = vld [vmem:[#allocation6 + $0x38] sm:$0xff]  ;;  %v1030_v12 = vld [vmem:[#allocation6 + $0x30] sm:$0xff]  ;;  %v1028_v14 = vld [vmem:[#allocation6 + $0x20] sm:$0xff] }
  0x2b   :  { %348 = vmatpush.bf16.msra.mxu2 %v1031_v11  ;;  %v1027_v15 = vld [vmem:[#allocation6 + $0x18] sm:$0xff]  ;;  %v1026_v16 = vld [vmem:[#allocation6 + $0x10] sm:$0xff]  ;;  %v1025_v23 = vld [vmem:[#allocation6 + $0x8] sm:$0xff] }
  0x2c   :  { %266 = vmatpush.bf16.msra.mxu1 %v1022_v4  ;;  %v1081_v17 = vld [vmem:[%s1480_s2] ss:$0 sm:$0xff]  ;;  %v1024_v24 = vld [vmem:[#allocation6] sm:$0xff]  ;;  %v1039_v25 = vld [vmem:[#allocation7 + $0x38] sm:$0xff] }
  0x2d   :  { %431 = vmatpush.bf16.msra.mxu3 %v1039_v25  ;;  %v1038_v26 = vld [vmem:[#allocation7 + $0x30] sm:$0xff]  ;;  %v1037_v27 = vld [vmem:[#allocation7 + $0x28] sm:$0xff]  ;;  %v1036_v28 = vld [vmem:[#allocation7 + $0x20] sm:$0xff] }
  0x2e   :  { %v1035_v29 = vld [vmem:[#allocation7 + $0x18] sm:$0xff]  ;;  %v1034_v30 = vld [vmem:[#allocation7 + $0x10] sm:$0xff]  ;;  %v1033_v37 = vld [vmem:[#allocation7 + $0x8] sm:$0xff] }
  0x2f   :  { %349 = vmatpush.bf16.msra.mxu2 %v1030_v12  ;;  %v1082_v31 = vld [vmem:[%s1482_s4] ss:$0 sm:$0xff]  ;;  %v1032_v38 = vld [vmem:[#allocation7] sm:$0xff]  ;;  %v1047_v39 = vld [vmem:[#allocation9 + $0x38] sm:$0xff] }
  0x30   :  { %267 = vmatpush.bf16.msra.mxu1 %v1021_v5  ;;  %514 = vmatpush.bf16.msrb.mxu0 %v1047_v39  ;;  %v1046_v40 = vld [vmem:[#allocation9 + $0x30] sm:$0xff]  ;;  %v1045_v41 = vld [vmem:[#allocation9 + $0x28] sm:$0xff]  ;;  %v1044_v42 = vld [vmem:[#allocation9 + $0x20] sm:$0xff] }
  0x31   :  { %432 = vmatpush.bf16.msra.mxu3 %v1038_v26  ;;  %v1043_v43 = vld [vmem:[#allocation9 + $0x18] sm:$0xff]  ;;  %v1042_v44 = vld [vmem:[#allocation9 + $0x10] sm:$0xff]  ;;  %v1041_v51 = vld [vmem:[#allocation9 + $0x8] sm:$0xff] }
  0x32   :  { %v1083_v45 = vld [vmem:[%s1484_s6] ss:$0 sm:$0xff]  ;;  %v1040_v52 = vld [vmem:[#allocation9] sm:$0xff]  ;;  %v1055_v53 = vld [vmem:[#allocation10 + $0x38] sm:$0xff] }
  0x33   :  { %350 = vmatpush.bf16.msra.mxu2 %v1029_v13  ;;  %v1054_v54 = vld [vmem:[#allocation10 + $0x30] sm:$0xff]  ;;  %v1053_v55 = vld [vmem:[#allocation10 + $0x28] sm:$0xff]  ;;  %v1052_v56 = vld [vmem:[#allocation10 + $0x20] sm:$0xff] }
  0x34   :  { %268 = vmatpush.bf16.msra.mxu1 %v1020_v6  ;;  %515 = vmatpush.bf16.msrb.mxu0 %v1046_v40  ;;  %v1051_v57 = vld [vmem:[#allocation10 + $0x18] sm:$0xff]  ;;  %v1050_v58 = vld [vmem:[#allocation10 + $0x10] sm:$0xff]  ;;  %v1049_v1 = vld [vmem:[#allocation10 + $0x8] sm:$0xff] }
  0x35   :  { %433 = vmatpush.bf16.msra.mxu3 %v1037_v27  ;;  %v1084_v59 = vld [vmem:[%s1486_s8] ss:$0 sm:$0xff]  ;;  %v1048_v2 = vld [vmem:[#allocation10] sm:$0xff]  ;;  %v1063_v3 = vld [vmem:[#allocation12 + $0x38] sm:$0xff] }
  0x36   :  { %v1062_v4 = vld [vmem:[#allocation12 + $0x30] sm:$0xff]  ;;  %v1061_v5 = vld [vmem:[#allocation12 + $0x28] sm:$0xff]  ;;  %v1060_v6 = vld [vmem:[#allocation12 + $0x20] sm:$0xff] }
  0x37   :  { %351 = vmatpush.bf16.msra.mxu2 %v1028_v14 }
  0x38   :  { %269 = vmatpush.bf16.msra.mxu1 %v1019_v7  ;;  %516 = vmatpush.bf16.msrb.mxu0 %v1045_v41  ;;  %v1059_v7 = vld [vmem:[#allocation12 + $0x18] sm:$0xff] }
  0x39   :  { %434 = vmatpush.bf16.msra.mxu3 %v1036_v28 }
  0x3b   :  { %352 = vmatpush.bf16.msra.mxu2 %v1027_v15  ;;  %v1057_v15 = vld [vmem:[#allocation12 + $0x8] sm:$0xff] }
  0x3c   :  { %270 = vmatpush.bf16.msra.mxu1 %v1018_v8  ;;  %517 = vmatpush.bf16.msrb.mxu0 %v1044_v42  ;;  %v1058_v8 = vld [vmem:[#allocation12 + $0x10] sm:$0xff] }
  0x3d   :  { %435 = vmatpush.bf16.msra.mxu3 %v1035_v29  ;;  %v1065_v29 = vld [vmem:[%s1493_s15 + $0x8] sm:$0xff] }
  0x3f   :  { %353 = vmatpush.bf16.msra.mxu2 %v1026_v16  ;;  %v1056_v16 = vld [vmem:[#allocation12] sm:$0xff] }
  0x40   :  { %271 = vmatpush.bf16.msra.mxu1 %v1017_v9  ;;  %518 = vmatpush.bf16.msrb.mxu0 %v1043_v43  ;;  %v1085_v9 = vld [vmem:[%s1488_s10] ss:$0 sm:$0xff] }
  0x41   :  { %436 = vmatpush.bf16.msra.mxu3 %v1034_v30  ;;  %v1064_v30 = vld [vmem:[%s1493_s15] sm:$0xff] }
  0x43   :  { %354 = vmatpush.bf16.msra.mxu2 %v1025_v23  ;;  %v1086_v23 = vld [vmem:[%s1490_s12] ss:$0 sm:$0xff] }
  0x44   :  { %272 = vmatpush.bf16.msra.mxu1 %v1016_v10  ;;  %519 = vmatpush.bf16.msrb.mxu0 %v1042_v44 }
  0x45   :  { %437 = vmatpush.bf16.msra.mxu3 %v1033_v37  ;;  %v1088_v37 = vld [vmem:[%s1494_s16] ss:$0 sm:$0xff] }
  0x47   :  { %355 = vmatpush.bf16.msra.mxu2 %v1024_v24 }
  0x48   :  { %520 = vmatpush.bf16.msrb.mxu0 %v1041_v51  ;;  %597 = vmatpush.bf16.msrb.mxu1 %v1055_v53 }
  0x49   :  { %438 = vmatpush.bf16.msra.mxu3 %v1032_v38 }
  0x4b   :  { %680 = vmatpush.bf16.msrb.mxu2 %v1063_v3 }
  0x4c   :  { %521 = vmatpush.bf16.msrb.mxu0 %v1040_v52  ;;  %598 = vmatpush.bf16.msrb.mxu1 %v1054_v54 }
  0x4f   :  { %681 = vmatpush.bf16.msrb.mxu2 %v1062_v4 }
  0x50   :  { %599 = vmatpush.bf16.msrb.mxu1 %v1053_v55 }
  0x53   :  { %682 = vmatpush.bf16.msrb.mxu2 %v1061_v5 }
  0x54   :  { %600 = vmatpush.bf16.msrb.mxu1 %v1052_v56 }
  0x57   :  { %683 = vmatpush.bf16.msrb.mxu2 %v1060_v6 }
  0x58   :  { %601 = vmatpush.bf16.msrb.mxu1 %v1051_v57 }
  0x5b   :  { %684 = vmatpush.bf16.msrb.mxu2 %v1059_v7 }
  0x5c   :  { %602 = vmatpush.bf16.msrb.mxu1 %v1050_v58 }
  0x5f   :  { %685 = vmatpush.bf16.msrb.mxu2 %v1058_v8 }
  0x60   :  { %603 = vmatpush.bf16.msrb.mxu1 %v1049_v1 }
  0x63   :  { %686 = vmatpush.bf16.msrb.mxu2 %v1057_v15 }
  0x64   :  { %604 = vmatpush.bf16.msrb.mxu1 %v1048_v2 }
  0x67   :  { %687 = vmatpush.bf16.msrb.mxu2 %v1056_v16 }
  0xa7   :  { %v191_v18 = vpop.f32.mrf.mxu0 }
  0xa8   :  { %v192_v19 = vadd.f32 %v1081_v17, %v191_v18  ;;  %v1071_v17 = vld [vmem:[%s1493_s15 + $0x38] sm:$0xff]  ;;  %v1070_v18 = vld [vmem:[%s1493_s15 + $0x30] sm:$0xff] }
  0xa9   :  { %763 = vmatpush.bf16.msrb.mxu3 %v1071_v17 }
  0xaa   :  { %v195_v20 = vmax.f32 %v192_v19, 0.0  ;;  %v1069_v19 = vld [vmem:[%s1493_s15 + $0x28] sm:$0xff] }
  0xac   :  { %v196_v21 = vpack.c.bf16 %v195_v20, %v195_v20  ;;  %v1068_v20 = vld [vmem:[%s1493_s15 + $0x20] sm:$0xff] }
  0xad   :  { %764 = vmatpush.bf16.msrb.mxu3 %v1070_v18 }
  0xae   :  { %273 = vmatmul.bf16.vlgmr.msra.gmra.mxu1 %v196_v21  ;;  %v1067_v21 = vld [vmem:[%s1493_s15 + $0x18] sm:$0xff] }
  0xaf   :  { %v193_v22 = vpop.f32.mrf.mxu0 }
  0xb0   :  { %v1066_v22 = vld [vmem:[%s1493_s15 + $0x10] sm:$0xff] }
  0xb1   :  { %765 = vmatpush.bf16.msrb.mxu3 %v1069_v19 }
  0xb5   :  { %766 = vmatpush.bf16.msrb.mxu3 %v1068_v20 }
  0xb9   :  { %767 = vmatpush.bf16.msrb.mxu3 %v1067_v21 }
  0xbd   :  { %768 = vmatpush.bf16.msrb.mxu3 %v1066_v22 }
  0xc1   :  { %769 = vmatpush.bf16.msrb.mxu3 %v1065_v29 }
  0xc5   :  { %770 = vmatpush.bf16.msrb.mxu3 %v1064_v30 }
 0x12b   :  { %v274_v32 = vpop.f32.mrf.mxu1 }
 0x12c   :  { %v275_v33 = vadd.f32 %v1082_v31, %v274_v32  ;;  %v1087_v31 = vld [vmem:[%s1492_s14] ss:$0 sm:$0xff] }
 0x12e   :  { %v278_v34 = vmax.f32 %v275_v33, 0.0 }
 0x130   :  { %v279_v35 = vpack.c.bf16 %v278_v34, %v278_v34 }
 0x132   :  { %356 = vmatmul.bf16.vlgmr.msra.gmra.mxu2 %v279_v35 }
 0x133   :  { %v276_v36 = vpop.f32.mrf.mxu1 }
 0x1b5   :  { %v357_v46 = vpop.f32.mrf.mxu2 }
 0x1b6   :  { %v358_v47 = vadd.f32 %v1083_v45, %v357_v46 }
 0x1b8   :  { %v361_v48 = vmax.f32 %v358_v47, 0.0 }
 0x1ba   :  { %v362_v49 = vpack.c.bf16 %v361_v48, %v361_v48 }
 0x1bc   :  { %439 = vmatmul.bf16.vlgmr.msra.gmra.mxu3 %v362_v49 }
 0x1bd   :  { %v359_v50 = vpop.f32.mrf.mxu2 }
 0x23f   :  { %v440_v60 = vpop.f32.mrf.mxu3 }
 0x240   :  { %v441_v61 = vadd.f32 %v1084_v59, %v440_v60 }
 0x242   :  { %v444_v62 = vmax.f32 %v441_v61, 0.0 }
 0x244   :  { %v445_v63 = vpack.c.bf16 %v444_v62, %v444_v62 }
 0x246   :  { %522 = vmatmul.bf16.vlgmr.msrb.gmra.mxu0 %v445_v63 }
 0x247   :  { %v442_v0 = vpop.f32.mrf.mxu3 }
 0x2c3   :  { %v523_v10 = vpop.f32.mrf.mxu0 }
 0x2c4   :  { %v524_v11 = vadd.f32 %v1085_v9, %v523_v10 }
 0x2c6   :  { %v527_v12 = vmax.f32 %v524_v11, 0.0 }
 0x2c8   :  { %v528_v13 = vpack.c.bf16 %v527_v12, %v527_v12 }
 0x2ca   :  { %605 = vmatmul.bf16.vlgmr.msrb.gmra.mxu1 %v528_v13 }
 0x2cb   :  { %v525_v14 = vpop.f32.mrf.mxu0 }
 0x347   :  { %v606_v24 = vpop.f32.mrf.mxu1 }
 0x348   :  { %v607_v25 = vadd.f32 %v1086_v23, %v606_v24 }
 0x34a   :  { %v610_v26 = vmax.f32 %v607_v25, 0.0 }
 0x34c   :  { %v611_v27 = vpack.c.bf16 %v610_v26, %v610_v26 }
 0x34e   :  { %688 = vmatmul.bf16.vlgmr.msrb.gmra.mxu2 %v611_v27 }
 0x34f   :  { %v608_v28 = vpop.f32.mrf.mxu1 }
 0x3d1   :  { %v689_v32 = vpop.f32.mrf.mxu2 }
 0x3d2   :  { %v690_v33 = vadd.f32 %v1087_v31, %v689_v32 }
 0x3d4   :  { %v693_v34 = vmax.f32 %v690_v33, 0.0 }
 0x3d6   :  { %v694_v35 = vpack.c.bf16 %v693_v34, %v693_v34 }
 0x3d8   :  { %771 = vmatmul.bf16.vlgmr.msrb.gmra.mxu3 %v694_v35 }
 0x3d9   :  { %v691_v36 = vpop.f32.mrf.mxu2 }
 0x45b   :  { %v772_v38 = vpop.f32.mrf.mxu3 }
 0x45c   :  { %v773_v39 = vadd.f32 %v1088_v37, %v772_v38 }
 0x45e   :  { %777 = vst.msk [vmem:[%s1495_s17] sm:$0xff] %vm776_vm1, %v773_v39 }
 0x463   :  { %v774_v40 = vpop.f32.mrf.mxu3 }
 0x464   :  { %782 = vsyncpa [#allocation3], 1 }
 0x465   :  { %783 = vsyncpa [#allocation5], 1 }
 0x466   :  { %784 = vsyncpa [#allocation8], 1 }
 0x467   :  { %785 = vsyncpa [#allocation11], 1 }

// kernel: _nn_forward_impl.1
= control target key start
LH: loop header
LB: loop body
LE: loop exit
PB: predicated region body
PF: predicated region fallthrough
CT: control target
= control target key end

     0   :  { %s1478_s0 = inlined_call_operand.hbm [shape: f32[8,16], index: 0, kind: input, shape index: {}]   ;;  %s1479_s1 = inlined_call_operand.hbm [shape: bf16[16,128], index: 1, kind: input, shape index: {}]   ;;  %s1480_s2 = inlined_call_operand.vmem [shape: f32[1,128], index: 2, kind: input, shape index: {}]   ;;  %s1481_s3 = inlined_call_operand.vmem [shape: bf16[128,128], index: 3, kind: input, shape index: {}]   ;;  %s1482_s4 = inlined_call_operand.vmem [shape: f32[1,128], index: 4, kind: input, shape index: {}]   ;;  %s1483_s5 = inlined_call_operand.hbm [shape: bf16[128,128], index: 5, kind: input, shape index: {}]   ;;  %s1484_s6 = inlined_call_operand.vmem [shape: f32[1,128], index: 6, kind: input, shape index: {}]   ;;  %s1485_s7 = inlined_call_operand.hbm [shape: bf16[128,128], index: 7, kind: input, shape index: {}]   ;;  %s1486_s8 = inlined_call_operand.vmem [shape: f32[1,128], index: 8, kind: input, shape index: {}]   ;;  %s1487_s9 = inlined_call_operand.hbm [shape: bf16[128,128], index: 9, kind: input, shape index: {}]   ;;  %s1488_s10 = inlined_call_operand.vmem [shape: f32[1,128], index: 10, kind: input, shape index: {}]   ;;  %s1489_s11 = inlined_call_operand.hbm [shape: bf16[128,128], index: 11, kind: input, shape index: {}]   ;;  %s1490_s12 = inlined_call_operand.vmem [shape: f32[1,128], index: 12, kind: input, shape index: {}]   ;;  %s1491_s13 = inlined_call_operand.hbm [shape: bf16[128,128], index: 13, kind: input, shape index: {}]   ;;  %s1492_s14 = inlined_call_operand.vmem [shape: f32[1,128], index: 14, kind: input, shape index: {}]   ;;  %s1493_s15 = inlined_call_operand.vmem [shape: bf16[128,4], index: 15, kind: input, shape index: {}]   ;;  %s1494_s16 = inlined_call_operand.vmem [shape: f32[1,4], index: 16, kind: input, shape index: {}]   ;;  %s1495_s17 = inlined_call_operand.vmem [shape: f32[8,4], index: 17, kind: output, shape index: {}]  }
   0x1   :  { %1496 = sst [smem:[#allocation17_spill]] %s1478_s0 }
   0x2   :  { %1497 = sst [smem:[#allocation18_spill]] %s1479_s1 }
   0x3   :  { %22 = vsyncpa [#allocation3], 0 }
   0x4   :  { %23 = vsyncpa [#allocation5], 0 }
   0x5   :  { %24 = vsyncpa [#allocation8], 0  ;;  %s1498_s26 = sld [smem:[#allocation18_spill]] }
   0xb   :  { %s41_s27 = sshll.u32 %s1498_s26, 4  ;;  %s42_s27 = int_to_ptr.hbm [resolvable:$true] %s41_s27 }
   0xc   :  { %25 = vsyncpa [#allocation11], 0  ;;  %s1265_s28 = smov [#allocation4]   ;;  %s75_s18 = sshll.u32 %s1485_s7, 4  ;;  %s76_s18 = int_to_ptr.hbm [resolvable:$true] %s75_s18 }
   0xd   :  { %s43_s29 = sshll.u32 %s1265_s28, 4  ;;  %s1266_s19 = smov 64   ;;  %s44_s29 = int_to_ptr.vmem [resolvable:$true] %s43_s29 }
   0xe   :  { %s1267_s1 = smov 4   ;;  %s1268_s20 = smov [#allocation7]  }
   0xf   :  { %49 = dma.hbm_to_vmem [thread:$0]  %s42_s27, 128, %s44_s29, [#allocation5], %s1266_s19, %s1266_s19, %s1267_s1  }
  0x10   :  { %s77_s21 = sshll.u32 %s1268_s20, 4  ;;  %s105_s24 = sshll.u32 %s1489_s11, 4  ;;  %s78_s21 = int_to_ptr.vmem [resolvable:$true] %s77_s21  ;;  %s106_s24 = int_to_ptr.hbm [resolvable:$true] %s105_s24 }
  0x11   :  { %83 = dma.hbm_to_vmem [thread:$0]  %s76_s18, 1024, %s78_s21, [#allocation8], %s1266_s19, %s1266_s19, %s1267_s1  }
  0x12   :  { %s1499_s26 = sld [smem:[#allocation17_spill]]  ;;  %s1269_s0 = smov [#allocation10]  }
  0x13   :  { %s107_s30 = sshll.u32 %s1269_s0, 4  ;;  %s1270_s27 = smov [#allocation2]   ;;  %s108_s30 = int_to_ptr.vmem [resolvable:$true] %s107_s30 }
  0x14   :  { %113 = dma.hbm_to_vmem [thread:$0]  %s106_s24, 1024, %s108_s30, [#allocation11], %s1266_s19, %s1266_s19, %s1267_s1  }
  0x15   :  { %s33_s11 = sshll.u32 %s1270_s27, 4  ;;  %s60_s22 = sshll.u32 %s1483_s5, 4  ;;  %s34_s11 = int_to_ptr.vmem [resolvable:$true] %s33_s11  ;;  %s61_s22 = int_to_ptr.hbm [resolvable:$true] %s60_s22 }
  0x16   :  { %s90_s23 = sshll.u32 %s1487_s9, 4  ;;  %s1271_s7 = smov [#allocation6]   ;;  %s91_s23 = int_to_ptr.hbm [resolvable:$true] %s90_s23 }
  0x17   :  { %s62_s25 = sshll.u32 %s1271_s7, 4  ;;  %s1272_s24 = smov [#allocation9]   ;;  %s63_s25 = int_to_ptr.vmem [resolvable:$true] %s62_s25 }
  0x18   :  { %s31_s28 = sshll.u32 %s1499_s26, 4  ;;  %s92_s26 = sshll.u32 %s1272_s24, 4  ;;  %s32_s28 = int_to_ptr.hbm [resolvable:$true] %s31_s28  ;;  %s93_s26 = int_to_ptr.vmem [resolvable:$true] %s92_s26 }
  0x19   :  { %36 = dma.hbm_to_vmem [thread:$0]  %s32_s28, 128, %s34_s11, [#allocation3]  }
  0x1a   :  { %68 = dma.hbm_to_vmem [thread:$0]  %s61_s22, 1024, %s63_s25, [#allocation5], %s1266_s19, %s1266_s19, %s1267_s1  }
  0x1b   :  { %s120_s5 = sshll.u32 %s1491_s13, 4  ;;  %s1273_s9 = smov [#allocation12]   ;;  %s121_s5 = int_to_ptr.hbm [resolvable:$true] %s120_s5 }
  0x1c   :  { %98 = dma.hbm_to_vmem [thread:$0]  %s91_s23, 1024, %s93_s26, [#allocation8], %s1266_s19, %s1266_s19, %s1267_s1  }
  0x1d   :  { %s122_s28 = sshll.u32 %s1273_s9, 4  ;;  %s123_s28 = int_to_ptr.vmem [resolvable:$true] %s122_s28 }
  0x1e   :  { %128 = dma.hbm_to_vmem [thread:$0]  %s121_s5, 1024, %s123_s28, [#allocation11], %s1266_s19, %s1266_s19, %s1267_s1  }
  0x1f   :  { %1257 = dma.done.wait [#allocation3], 128  }
  0x20   :  { %1258 = vsyncadd [#allocation3], 4294967168 }
  0x21   :  { %1259 = dma.done.wait [#allocation5], 1152  }
  0x22   :  { %1260 = vsyncadd [#allocation5], 4294966144 }
  0x23   :  { %1261 = dma.done.wait [#allocation8], 2048  }
  0x24   :  { %1262 = vsyncadd [#allocation8], 4294965248 }
  0x25   :  { %1263 = dma.done.wait [#allocation11], 2048  }
  0x26   :  { %1264 = vsyncadd [#allocation11], 4294965248  ;;  %v1015_v0 = vld [vmem:[#allocation4] sm:$0xff]  ;;  %v164_v1 = vld [vmem:[#allocation2] sm:$0xff]  ;;  %vm178_vm0 = vcmask 130048   ;;  %vm776_vm1 = vcmask 31744  }
  0x27   :  { %v1023_v2 = vld [vmem:[%s1481_s3 + $0x38] sm:$0xff]  ;;  %v165_v3 = vpack.c.bf16 %v164_v1, %v164_v1  ;;  %189 = vmatpush.bf16.msra.mxu0 %v1015_v0  ;;  %v1022_v4 = vld [vmem:[%s1481_s3 + $0x30] sm:$0xff]  ;;  %v1021_v5 = vld [vmem:[%s1481_s3 + $0x28] sm:$0xff] }
  0x28   :  { %265 = vmatpush.bf16.msra.mxu1 %v1023_v2  ;;  %v1020_v6 = vld [vmem:[%s1481_s3 + $0x20] sm:$0xff]  ;;  %v1019_v7 = vld [vmem:[%s1481_s3 + $0x18] sm:$0xff]  ;;  %v1018_v8 = vld [vmem:[%s1481_s3 + $0x10] sm:$0xff] }
  0x29   :  { %v1017_v9 = vld [vmem:[%s1481_s3 + $0x8] sm:$0xff]  ;;  %v1016_v10 = vld [vmem:[%s1481_s3] sm:$0xff]  ;;  %v1029_v13 = vld [vmem:[#allocation6 + $0x28] sm:$0xff] }
  0x2a   :  { %790 = vmatmul.msk.bf16.vlgmr.msra.gmra.mxu0 %vm178_vm0, %v165_v3  ;;  %v1031_v11 = vld [vmem:[#allocation6 + $0x38] sm:$0xff]  ;;  %v1030_v12 = vld [vmem:[#allocation6 + $0x30] sm:$0xff]  ;;  %v1028_v14 = vld [vmem:[#allocation6 + $0x20] sm:$0xff] }
  0x2b   :  { %348 = vmatpush.bf16.msra.mxu2 %v1031_v11  ;;  %v1027_v15 = vld [vmem:[#allocation6 + $0x18] sm:$0xff]  ;;  %v1026_v16 = vld [vmem:[#allocation6 + $0x10] sm:$0xff]  ;;  %v1025_v23 = vld [vmem:[#allocation6 + $0x8] sm:$0xff] }
  0x2c   :  { %266 = vmatpush.bf16.msra.mxu1 %v1022_v4  ;;  %v1081_v17 = vld [vmem:[%s1480_s2] ss:$0 sm:$0xff]  ;;  %v1024_v24 = vld [vmem:[#allocation6] sm:$0xff]  ;;  %v1039_v25 = vld [vmem:[#allocation7 + $0x38] sm:$0xff] }
  0x2d   :  { %431 = vmatpush.bf16.msra.mxu3 %v1039_v25  ;;  %v1038_v26 = vld [vmem:[#allocation7 + $0x30] sm:$0xff]  ;;  %v1037_v27 = vld [vmem:[#allocation7 + $0x28] sm:$0xff]  ;;  %v1036_v28 = vld [vmem:[#allocation7 + $0x20] sm:$0xff] }
  0x2e   :  { %v1035_v29 = vld [vmem:[#allocation7 + $0x18] sm:$0xff]  ;;  %v1034_v30 = vld [vmem:[#allocation7 + $0x10] sm:$0xff]  ;;  %v1033_v37 = vld [vmem:[#allocation7 + $0x8] sm:$0xff] }
  0x2f   :  { %349 = vmatpush.bf16.msra.mxu2 %v1030_v12  ;;  %v1082_v31 = vld [vmem:[%s1482_s4] ss:$0 sm:$0xff]  ;;  %v1032_v38 = vld [vmem:[#allocation7] sm:$0xff]  ;;  %v1047_v39 = vld [vmem:[#allocation9 + $0x38] sm:$0xff] }
  0x30   :  { %267 = vmatpush.bf16.msra.mxu1 %v1021_v5  ;;  %514 = vmatpush.bf16.msrb.mxu0 %v1047_v39  ;;  %v1046_v40 = vld [vmem:[#allocation9 + $0x30] sm:$0xff]  ;;  %v1045_v41 = vld [vmem:[#allocation9 + $0x28] sm:$0xff]  ;;  %v1044_v42 = vld [vmem:[#allocation9 + $0x20] sm:$0xff] }
  0x31   :  { %432 = vmatpush.bf16.msra.mxu3 %v1038_v26  ;;  %v1043_v43 = vld [vmem:[#allocation9 + $0x18] sm:$0xff]  ;;  %v1042_v44 = vld [vmem:[#allocation9 + $0x10] sm:$0xff]  ;;  %v1041_v51 = vld [vmem:[#allocation9 + $0x8] sm:$0xff] }
  0x32   :  { %v1083_v45 = vld [vmem:[%s1484_s6] ss:$0 sm:$0xff]  ;;  %v1040_v52 = vld [vmem:[#allocation9] sm:$0xff]  ;;  %v1055_v53 = vld [vmem:[#allocation10 + $0x38] sm:$0xff] }
  0x33   :  { %350 = vmatpush.bf16.msra.mxu2 %v1029_v13  ;;  %v1054_v54 = vld [vmem:[#allocation10 + $0x30] sm:$0xff]  ;;  %v1053_v55 = vld [vmem:[#allocation10 + $0x28] sm:$0xff]  ;;  %v1052_v56 = vld [vmem:[#allocation10 + $0x20] sm:$0xff] }
  0x34   :  { %268 = vmatpush.bf16.msra.mxu1 %v1020_v6  ;;  %515 = vmatpush.bf16.msrb.mxu0 %v1046_v40  ;;  %v1051_v57 = vld [vmem:[#allocation10 + $0x18] sm:$0xff]  ;;  %v1050_v58 = vld [vmem:[#allocation10 + $0x10] sm:$0xff]  ;;  %v1049_v1 = vld [vmem:[#allocation10 + $0x8] sm:$0xff] }
  0x35   :  { %433 = vmatpush.bf16.msra.mxu3 %v1037_v27  ;;  %v1084_v59 = vld [vmem:[%s1486_s8] ss:$0 sm:$0xff]  ;;  %v1048_v2 = vld [vmem:[#allocation10] sm:$0xff]  ;;  %v1063_v3 = vld [vmem:[#allocation12 + $0x38] sm:$0xff] }
  0x36   :  { %v1062_v4 = vld [vmem:[#allocation12 + $0x30] sm:$0xff]  ;;  %v1061_v5 = vld [vmem:[#allocation12 + $0x28] sm:$0xff]  ;;  %v1060_v6 = vld [vmem:[#allocation12 + $0x20] sm:$0xff] }
  0x37   :  { %351 = vmatpush.bf16.msra.mxu2 %v1028_v14 }
  0x38   :  { %269 = vmatpush.bf16.msra.mxu1 %v1019_v7  ;;  %516 = vmatpush.bf16.msrb.mxu0 %v1045_v41  ;;  %v1059_v7 = vld [vmem:[#allocation12 + $0x18] sm:$0xff] }
  0x39   :  { %434 = vmatpush.bf16.msra.mxu3 %v1036_v28 }
  0x3b   :  { %352 = vmatpush.bf16.msra.mxu2 %v1027_v15  ;;  %v1057_v15 = vld [vmem:[#allocation12 + $0x8] sm:$0xff] }
  0x3c   :  { %270 = vmatpush.bf16.msra.mxu1 %v1018_v8  ;;  %517 = vmatpush.bf16.msrb.mxu0 %v1044_v42  ;;  %v1058_v8 = vld [vmem:[#allocation12 + $0x10] sm:$0xff] }
  0x3d   :  { %435 = vmatpush.bf16.msra.mxu3 %v1035_v29  ;;  %v1065_v29 = vld [vmem:[%s1493_s15 + $0x8] sm:$0xff] }
  0x3f   :  { %353 = vmatpush.bf16.msra.mxu2 %v1026_v16  ;;  %v1056_v16 = vld [vmem:[#allocation12] sm:$0xff] }
  0x40   :  { %271 = vmatpush.bf16.msra.mxu1 %v1017_v9  ;;  %518 = vmatpush.bf16.msrb.mxu0 %v1043_v43  ;;  %v1085_v9 = vld [vmem:[%s1488_s10] ss:$0 sm:$0xff] }
  0x41   :  { %436 = vmatpush.bf16.msra.mxu3 %v1034_v30  ;;  %v1064_v30 = vld [vmem:[%s1493_s15] sm:$0xff] }
  0x43   :  { %354 = vmatpush.bf16.msra.mxu2 %v1025_v23  ;;  %v1086_v23 = vld [vmem:[%s1490_s12] ss:$0 sm:$0xff] }
  0x44   :  { %272 = vmatpush.bf16.msra.mxu1 %v1016_v10  ;;  %519 = vmatpush.bf16.msrb.mxu0 %v1042_v44 }
  0x45   :  { %437 = vmatpush.bf16.msra.mxu3 %v1033_v37  ;;  %v1088_v37 = vld [vmem:[%s1494_s16] ss:$0 sm:$0xff] }
  0x47   :  { %355 = vmatpush.bf16.msra.mxu2 %v1024_v24 }
  0x48   :  { %520 = vmatpush.bf16.msrb.mxu0 %v1041_v51  ;;  %597 = vmatpush.bf16.msrb.mxu1 %v1055_v53 }
  0x49   :  { %438 = vmatpush.bf16.msra.mxu3 %v1032_v38 }
  0x4b   :  { %680 = vmatpush.bf16.msrb.mxu2 %v1063_v3 }
  0x4c   :  { %521 = vmatpush.bf16.msrb.mxu0 %v1040_v52  ;;  %598 = vmatpush.bf16.msrb.mxu1 %v1054_v54 }
  0x4f   :  { %681 = vmatpush.bf16.msrb.mxu2 %v1062_v4 }
  0x50   :  { %599 = vmatpush.bf16.msrb.mxu1 %v1053_v55 }
  0x53   :  { %682 = vmatpush.bf16.msrb.mxu2 %v1061_v5 }
  0x54   :  { %600 = vmatpush.bf16.msrb.mxu1 %v1052_v56 }
  0x57   :  { %683 = vmatpush.bf16.msrb.mxu2 %v1060_v6 }
  0x58   :  { %601 = vmatpush.bf16.msrb.mxu1 %v1051_v57 }
  0x5b   :  { %684 = vmatpush.bf16.msrb.mxu2 %v1059_v7 }
  0x5c   :  { %602 = vmatpush.bf16.msrb.mxu1 %v1050_v58 }
  0x5f   :  { %685 = vmatpush.bf16.msrb.mxu2 %v1058_v8 }
  0x60   :  { %603 = vmatpush.bf16.msrb.mxu1 %v1049_v1 }
  0x63   :  { %686 = vmatpush.bf16.msrb.mxu2 %v1057_v15 }
  0x64   :  { %604 = vmatpush.bf16.msrb.mxu1 %v1048_v2 }
  0x67   :  { %687 = vmatpush.bf16.msrb.mxu2 %v1056_v16 }
  0xa7   :  { %v191_v18 = vpop.f32.mrf.mxu0 }
  0xa8   :  { %v192_v19 = vadd.f32 %v1081_v17, %v191_v18  ;;  %v1071_v17 = vld [vmem:[%s1493_s15 + $0x38] sm:$0xff]  ;;  %v1070_v18 = vld [vmem:[%s1493_s15 + $0x30] sm:$0xff] }
  0xa9   :  { %763 = vmatpush.bf16.msrb.mxu3 %v1071_v17 }
  0xaa   :  { %v195_v20 = vmax.f32 %v192_v19, 0.0  ;;  %v1069_v19 = vld [vmem:[%s1493_s15 + $0x28] sm:$0xff] }
  0xac   :  { %v196_v21 = vpack.c.bf16 %v195_v20, %v195_v20  ;;  %v1068_v20 = vld [vmem:[%s1493_s15 + $0x20] sm:$0xff] }
  0xad   :  { %764 = vmatpush.bf16.msrb.mxu3 %v1070_v18 }
  0xae   :  { %273 = vmatmul.bf16.vlgmr.msra.gmra.mxu1 %v196_v21  ;;  %v1067_v21 = vld [vmem:[%s1493_s15 + $0x18] sm:$0xff] }
  0xaf   :  { %v193_v22 = vpop.f32.mrf.mxu0 }
  0xb0   :  { %v1066_v22 = vld [vmem:[%s1493_s15 + $0x10] sm:$0xff] }
  0xb1   :  { %765 = vmatpush.bf16.msrb.mxu3 %v1069_v19 }
  0xb5   :  { %766 = vmatpush.bf16.msrb.mxu3 %v1068_v20 }
  0xb9   :  { %767 = vmatpush.bf16.msrb.mxu3 %v1067_v21 }
  0xbd   :  { %768 = vmatpush.bf16.msrb.mxu3 %v1066_v22 }
  0xc1   :  { %769 = vmatpush.bf16.msrb.mxu3 %v1065_v29 }
  0xc5   :  { %770 = vmatpush.bf16.msrb.mxu3 %v1064_v30 }
 0x12b   :  { %v274_v32 = vpop.f32.mrf.mxu1 }
 0x12c   :  { %v275_v33 = vadd.f32 %v1082_v31, %v274_v32  ;;  %v1087_v31 = vld [vmem:[%s1492_s14] ss:$0 sm:$0xff] }
 0x12e   :  { %v278_v34 = vmax.f32 %v275_v33, 0.0 }
 0x130   :  { %v279_v35 = vpack.c.bf16 %v278_v34, %v278_v34 }
 0x132   :  { %356 = vmatmul.bf16.vlgmr.msra.gmra.mxu2 %v279_v35 }
 0x133   :  { %v276_v36 = vpop.f32.mrf.mxu1 }
 0x1b5   :  { %v357_v46 = vpop.f32.mrf.mxu2 }
 0x1b6   :  { %v358_v47 = vadd.f32 %v1083_v45, %v357_v46 }
 0x1b8   :  { %v361_v48 = vmax.f32 %v358_v47, 0.0 }
 0x1ba   :  { %v362_v49 = vpack.c.bf16 %v361_v48, %v361_v48 }
 0x1bc   :  { %439 = vmatmul.bf16.vlgmr.msra.gmra.mxu3 %v362_v49 }
 0x1bd   :  { %v359_v50 = vpop.f32.mrf.mxu2 }
 0x23f   :  { %v440_v60 = vpop.f32.mrf.mxu3 }
 0x240   :  { %v441_v61 = vadd.f32 %v1084_v59, %v440_v60 }
 0x242   :  { %v444_v62 = vmax.f32 %v441_v61, 0.0 }
 0x244   :  { %v445_v63 = vpack.c.bf16 %v444_v62, %v444_v62 }
 0x246   :  { %522 = vmatmul.bf16.vlgmr.msrb.gmra.mxu0 %v445_v63 }
 0x247   :  { %v442_v0 = vpop.f32.mrf.mxu3 }
 0x2c3   :  { %v523_v10 = vpop.f32.mrf.mxu0 }
 0x2c4   :  { %v524_v11 = vadd.f32 %v1085_v9, %v523_v10 }
 0x2c6   :  { %v527_v12 = vmax.f32 %v524_v11, 0.0 }
 0x2c8   :  { %v528_v13 = vpack.c.bf16 %v527_v12, %v527_v12 }
 0x2ca   :  { %605 = vmatmul.bf16.vlgmr.msrb.gmra.mxu1 %v528_v13 }
 0x2cb   :  { %v525_v14 = vpop.f32.mrf.mxu0 }
 0x347   :  { %v606_v24 = vpop.f32.mrf.mxu1 }
 0x348   :  { %v607_v25 = vadd.f32 %v1086_v23, %v606_v24 }
 0x34a   :  { %v610_v26 = vmax.f32 %v607_v25, 0.0 }
 0x34c   :  { %v611_v27 = vpack.c.bf16 %v610_v26, %v610_v26 }
 0x34e   :  { %688 = vmatmul.bf16.vlgmr.msrb.gmra.mxu2 %v611_v27 }
 0x34f   :  { %v608_v28 = vpop.f32.mrf.mxu1 }
 0x3d1   :  { %v689_v32 = vpop.f32.mrf.mxu2 }
 0x3d2   :  { %v690_v33 = vadd.f32 %v1087_v31, %v689_v32 }
 0x3d4   :  { %v693_v34 = vmax.f32 %v690_v33, 0.0 }
 0x3d6   :  { %v694_v35 = vpack.c.bf16 %v693_v34, %v693_v34 }
 0x3d8   :  { %771 = vmatmul.bf16.vlgmr.msrb.gmra.mxu3 %v694_v35 }
 0x3d9   :  { %v691_v36 = vpop.f32.mrf.mxu2 }
 0x45b   :  { %v772_v38 = vpop.f32.mrf.mxu3 }
 0x45c   :  { %v773_v39 = vadd.f32 %v1088_v37, %v772_v38 }
 0x45e   :  { %777 = vst.msk [vmem:[%s1495_s17] sm:$0xff] %vm776_vm1, %v773_v39 }
 0x463   :  { %v774_v40 = vpop.f32.mrf.mxu3 }
 0x464   :  { %782 = vsyncpa [#allocation3], 1 }
 0x465   :  { %783 = vsyncpa [#allocation5], 1 }
 0x466   :  { %784 = vsyncpa [#allocation8], 1 }
 0x467   :  { %785 = vsyncpa [#allocation11], 1 }

</bundles_post_ra>
